<compile_context>
chip_gen: v6e
topology: v6e:2x2x1
jax: 0.10.0
libtpu: 0.0.40
codegen_flags: <defaults>
</compile_context>

<pallas_src>
import jax
import jax.numpy as jnp
from jax.experimental import pallas as pl
from jax.experimental.pallas import tpu as pltpu


def _round_up(n, m):
    return ((n + m - 1) // m) * m


def _make_mix_kernel(cin_t, with_bias):
    """Returns a kernel computing out[o,m] = sum_i x[i,m] * w[i,o,m] (+ bias)."""

    def kernel(*refs):
        if with_bias:
            x_ref, w_ref, b_ref, o_ref, acc_ref = refs
        else:
            x_ref, w_ref, o_ref, acc_ref = refs
            b_ref = None

        k = pl.program_id(2)  # C_in reduction axis (last, "arbitrary")

        @pl.when(k == 0)
        def _init():
            acc_ref[...] = jnp.zeros_like(acc_ref)

        acc_re = acc_ref[0]          # (cout_t, Mp)
        acc_im = acc_ref[1]
        xr = x_ref[0, 0]             # (cin_t, Mp)
        xi = x_ref[0, 1]

        # Unrolled accumulation over the C_in tile: one fused complex MAC per
        # input channel; weight slices are loaded per-iteration to keep the
        # live set small (no (cin,cout,M) temporaries).
        for i in range(cin_t):
            xr_i = xr[i:i + 1, :]            # (1, Mp)
            xi_i = xi[i:i + 1, :]
            wr_i = w_ref[0, i, :, :]         # (cout_t, Mp)
            wi_i = w_ref[1, i, :, :]
            acc_re = acc_re + (xr_i * wr_i - xi_i * wi_i)
            acc_im = acc_im + (xr_i * wi_i + xi_i * wr_i)

        acc_ref[0] = acc_re
        acc_ref[1] = acc_im

        @pl.when(k == pl.num_programs(2) - 1)
        def _finalize():
            out_re = acc_ref[0]
            out_im = acc_ref[1]
            if with_bias:
                out_re = out_re + b_ref[0]
                out_im = out_im + b_ref[1]
            o_ref[0, 0] = out_re
            o_ref[0, 1] = out_im

    return kernel


def _fourier_mix(x_pk, w_pk, b_pk, with_bias, cin_t, cout_t):
    """x_pk: (B, 2, Cin_p, Mp); w_pk: (2, Cin_p, Cout_p, Mp); b_pk: (2, Cout_p, Mp)."""
    B, _, cin_p, mp = x_pk.shape
    cout_p = w_pk.shape[2]
    n_co = cout_p // cout_t
    n_ci = cin_p // cin_t

    x_spec = pl.BlockSpec((1, 2, cin_t, mp), lambda b, o, k: (b, 0, k, 0))
    w_spec = pl.BlockSpec((2, cin_t, cout_t, mp), lambda b, o, k: (0, k, o, 0))
    o_spec = pl.BlockSpec((1, 2, cout_t, mp), lambda b, o, k: (b, 0, o, 0))

    in_specs = [x_spec, w_spec]
    args = [x_pk, w_pk]
    if with_bias:
        in_specs.append(pl.BlockSpec((2, cout_t, mp), lambda b, o, k: (0, o, 0)))
        args.append(b_pk)

    return pl.pallas_call(
        _make_mix_kernel(cin_t, with_bias),
        out_shape=jax.ShapeDtypeStruct((B, 2, cout_p, mp), jnp.float32),
        grid=(B, n_co, n_ci),
        in_specs=in_specs,
        out_specs=o_spec,
        scratch_shapes=[pltpu.VMEM((2, cout_t, mp), jnp.float32)],
        compiler_params=pltpu.CompilerParams(
            dimension_semantics=("parallel", "parallel", "arbitrary"),
            vmem_limit_bytes=32 * 1024 * 1024),
    )(*args)


def fourier_conv3d(x, w_re, w_im, b_re, b_im, size_x, size_y, size_z,
                   bias=True, periodic=False, cin_tile=16, cout_tile=16):
    """x: (B, C_in, X, Y, Z) float32. Weights: (Cin, Cout, sx, sy, sz)."""
    if not periodic:
        x = jnp.pad(x, ((0, 0), (0, 0),
                        (0, size_x), (0, size_y), (0, size_z)))

    # Mode-count sanity checks (rfftn halves the last spatial axis).
    Xp, Yp, Zp = x.shape[-3:]
    assert size_x <= Xp and size_y <= Yp, "size_x/size_y exceed spatial extent"
    assert size_z <= Zp // 2 + 1, "size_z exceeds rfft half-spectrum length"

    x_ft = jnp.fft.rfftn(x, axes=(-3, -2, -1))                 # complex64
    B, Cin = x.shape[0], x.shape[1]
    Cout = w_re.shape[1]
    M = size_x * size_y * size_z

    # Tile sizes: multiples of 8 (sublane) when tiling, or full extent.
    cin_t = Cin if Cin <= cin_tile else cin_tile
    cout_t = Cout if Cout <= cout_tile else cout_tile
    cin_p = _round_up(Cin, cin_t)
    cout_p = _round_up(Cout, cout_t)
    mp = _round_up(M, 128)   # lane-dense loads/stores (unmasked vld/vst)

    # Pack re/im on a leading axis of size 2 (halves the DMA stream count).
    xk = x_ft[:, :, :size_x, :size_y, :size_z]
    x_pk = jnp.stack([jnp.real(xk), jnp.imag(xk)], axis=1)     # (B,2,Cin,sx,sy,sz)
    x_pk = x_pk.reshape(B, 2, Cin, M).astype(jnp.float32)
    x_pk = jnp.pad(x_pk, ((0, 0), (0, 0), (0, cin_p - Cin), (0, mp - M)))

    w_pk = jnp.stack([w_re, w_im], axis=0).reshape(2, Cin, Cout, M)
    w_pk = w_pk.astype(jnp.float32)
    w_pk = jnp.pad(w_pk, ((0, 0), (0, cin_p - Cin),
                          (0, cout_p - Cout), (0, mp - M)))

    if bias:
        b_pk = jnp.stack([b_re, b_im], axis=0).reshape(2, Cout, M)
        b_pk = b_pk.astype(jnp.float32)
        b_pk = jnp.pad(b_pk, ((0, 0), (0, cout_p - Cout), (0, mp - M)))
    else:
        b_pk = None   # bias refs skipped entirely (no zero-filled DMA)

    out_pk = _fourier_mix(x_pk, w_pk, b_pk, bias, cin_t, cout_t)
    out_pk = out_pk[:, :, :Cout, :M]                           # drop padding

    out_k = (out_pk[:, 0] + 1j * out_pk[:, 1]).astype(x_ft.dtype)
    out_k = out_k.reshape(B, Cout, size_x, size_y, size_z)
    out_ft = jnp.zeros((B, Cout) + x_ft.shape[2:], dtype=x_ft.dtype)
    out_ft = out_ft.at[:, :, :size_x, :size_y, :size_z].set(out_k)

    out = jnp.fft.irfftn(out_ft, s=x.shape[-3:], axes=(-3, -2, -1))
    if not periodic:
        out = out[..., :size_x, :size_y, :size_z]
    return out.astype(jnp.float32)


def _reference(x, w_re, w_im, b_re, b_im, size_x, size_y, size_z,
               bias=True, periodic=False):
    # Pure-JAX reference of the same (intended) semantics, for a sanity check.
    if not periodic:
        x = jnp.pad(x, ((0, 0), (0, 0),
                        (0, size_x), (0, size_y), (0, size_z)))
    x_ft = jnp.fft.rfftn(x, axes=(-3, -2, -1))
    w = w_re + 1j * w_im
    bvec = b_re + 1j * b_im
    xk = x_ft[:, :, :size_x, :size_y, :size_z]
    mixed = jnp.einsum('bixyz,ioxyz->boxyz', xk, w)
    if bias:
        mixed = mixed + bvec[None]
    B = x.shape[0]
    Cout = w.shape[1]
    out_ft = jnp.zeros((B, Cout) + x_ft.shape[2:], dtype=x_ft.dtype)
    out_ft = out_ft.at[:, :, :size_x, :size_y, :size_z].set(mixed)
    out = jnp.fft.irfftn(out_ft, s=x.shape[-3:], axes=(-3, -2, -1))
    if not periodic:
        out = out[..., :size_x, :size_y, :size_z]
    return out.astype(jnp.float32)


if __name__ == "__main__":
    key = jax.random.PRNGKey(0)
    B, Cin, Cout = 2, 4, 4
    size_x = size_y = size_z = 6        # M = 216 -> exercises lane padding to 256
    X, Y, Z = 6, 6, 6                   # input spatial dims

    k_x, k_wr, k_wi, k_br, k_bi = jax.random.split(key, 5)
    x = jax.random.normal(k_x, (B, Cin, X, Y, Z), dtype=jnp.float32)
    # Deterministic parameter init mirroring the module's shapes/scales.
    w_scale = 1.0 / (Cin * Cout)
    b_scale = 1.0 / Cout
    w_re = w_scale * jax.random.normal(
        k_wr, (Cin, Cout, size_x, size_y, size_z), dtype=jnp.float32)
    w_im = w_scale * jax.random.normal(
        k_wi, (Cin, Cout, size_x, size_y, size_z), dtype=jnp.float32)
    b_re = b_scale * jax.random.normal(
        k_br, (Cout, size_x, size_y, size_z), dtype=jnp.float32)
    b_im = b_scale * jax.random.normal(
        k_bi, (Cout, size_x, size_y, size_z), dtype=jnp.float32)

    out = fourier_conv3d(x, w_re, w_im, b_re, b_im,
                         size_x, size_y, size_z, bias=True, periodic=False)
    out = jax.block_until_ready(out)

    ref = _reference(x, w_re, w_im, b_re, b_im,
                     size_x, size_y, size_z, bias=True, periodic=False)
    ref = jax.block_until_ready(ref)

    assert out.shape == (B, Cout, size_x, size_y, size_z)
    assert jnp.max(jnp.abs(out - ref)) < 1e-4

    # Also exercise the bias=False variant (no bias refs / DMA at all).
    out_nb = fourier_conv3d(x, w_re, w_im, b_re, b_im,
                            size_x, size_y, size_z, bias=False, periodic=False)
    ref_nb = _reference(x, w_re, w_im, b_re, b_im,
                        size_x, size_y, size_z, bias=False, periodic=False)
    out_nb = jax.block_until_ready(out_nb)
    assert jnp.max(jnp.abs(out_nb - ref_nb)) < 1e-4

    print("KERNEL_OK")
</pallas_src>

<mosaic_0001>
module attributes {stable_mosaic.version = 11 : i64} {
  func.func @kernel(%arg0: i32, %arg1: i32, %arg2: i32, %arg3: memref<1x2x4x256xf32, #tpu.memory_space<vmem>>, %arg4: memref<2x4x4x256xf32, #tpu.memory_space<vmem>>, %arg5: memref<2x4x256xf32, #tpu.memory_space<vmem>>, %arg6: memref<1x2x4x256xf32, #tpu.memory_space<vmem>>, %arg7: memref<2x4x256xf32, #tpu.memory_space<vmem>>) attributes {dimension_semantics = [#tpu.dimension_semantics<parallel>, #tpu.dimension_semantics<parallel>, #tpu.dimension_semantics<arbitrary>], iteration_bounds = array<i64: 2, 1, 1>, scalar_prefetch = 0 : i64, scratch_operands = 1 : i64, tpu.core_type = #tpu.core_type<tc>, window_params = [{transform_indices = @transform_0, window_bounds = array<i64: 1, 2, 4, 256>}, {transform_indices = @transform_1, window_bounds = array<i64: 2, 4, 4, 256>}, {transform_indices = @transform_2, window_bounds = array<i64: 2, 4, 256>}, {transform_indices = @transform_3, window_bounds = array<i64: 1, 2, 4, 256>}]} {
    %c0_i32 = arith.constant 0 : i32
    %0 = arith.cmpi eq, %arg2, %c0_i32 : i32
    %1 = arith.extui %0 : i1 to i32
    %c0_i32_0 = arith.constant 0 : i32
    %2 = arith.cmpi ne, %1, %c0_i32_0 : i32
    scf.if %2 {
      %cst = arith.constant 0.000000e+00 : f32
      %92 = vector.broadcast %cst : f32 to vector<2x4x256xf32>
      %c0_51 = arith.constant 0 : index
      %c0_52 = arith.constant 0 : index
      %c0_53 = arith.constant 0 : index
      %93 = vector.load %arg7[%c0_51, %c0_52, %c0_53] : memref<2x4x256xf32, #tpu.memory_space<vmem>>, vector<2x4x256xf32>
      tpu.vector_store %arg7[%c0_51, %c0_52, %c0_53], %92 {strides = array<i32>} : memref<2x4x256xf32, #tpu.memory_space<vmem>>, vector<2x4x256xf32>,
    } else {
    }
    %c0 = arith.constant 0 : index
    %c0_1 = arith.constant 0 : index
    %c0_2 = arith.constant 0 : index
    %3 = vector.load %arg7[%c0, %c0_1, %c0_2] : memref<2x4x256xf32, #tpu.memory_space<vmem>>, vector<1x4x256xf32>
    %4 = vector.shape_cast %3 : vector<1x4x256xf32> to vector<4x256xf32>
    %c1 = arith.constant 1 : index
    %c0_3 = arith.constant 0 : index
    %c0_4 = arith.constant 0 : index
    %5 = vector.load %arg7[%c1, %c0_3, %c0_4] : memref<2x4x256xf32, #tpu.memory_space<vmem>>, vector<1x4x256xf32>
    %6 = vector.shape_cast %5 : vector<1x4x256xf32> to vector<4x256xf32>
    %c0_5 = arith.constant 0 : index
    %c0_6 = arith.constant 0 : index
    %c0_7 = arith.constant 0 : index
    %c0_8 = arith.constant 0 : index
    %7 = vector.load %arg3[%c0_5, %c0_6, %c0_7, %c0_8] : memref<1x2x4x256xf32, #tpu.memory_space<vmem>>, vector<1x1x4x256xf32>
    %8 = vector.shape_cast %7 : vector<1x1x4x256xf32> to vector<4x256xf32>
    %c0_9 = arith.constant 0 : index
    %c1_10 = arith.constant 1 : index
    %c0_11 = arith.constant 0 : index
    %c0_12 = arith.constant 0 : index
    %9 = vector.load %arg3[%c0_9, %c1_10, %c0_11, %c0_12] : memref<1x2x4x256xf32, #tpu.memory_space<vmem>>, vector<1x1x4x256xf32>
    %10 = vector.shape_cast %9 : vector<1x1x4x256xf32> to vector<4x256xf32>
    %11 = vector.extract_strided_slice %8 {offsets = [0, 0], sizes = [1, 256], strides = [1, 1]} : vector<4x256xf32> to vector<1x256xf32>
    %12 = vector.extract_strided_slice %10 {offsets = [0, 0], sizes = [1, 256], strides = [1, 1]} : vector<4x256xf32> to vector<1x256xf32>
    %c0_13 = arith.constant 0 : index
    %c0_14 = arith.constant 0 : index
    %c0_15 = arith.constant 0 : index
    %c0_16 = arith.constant 0 : index
    %13 = vector.load %arg4[%c0_13, %c0_14, %c0_15, %c0_16] : memref<2x4x4x256xf32, #tpu.memory_space<vmem>>, vector<1x1x4x256xf32>
    %14 = vector.shape_cast %13 : vector<1x1x4x256xf32> to vector<4x256xf32>
    %c1_17 = arith.constant 1 : index
    %c0_18 = arith.constant 0 : index
    %c0_19 = arith.constant 0 : index
    %c0_20 = arith.constant 0 : index
    %15 = vector.load %arg4[%c1_17, %c0_18, %c0_19, %c0_20] : memref<2x4x4x256xf32, #tpu.memory_space<vmem>>, vector<1x1x4x256xf32>
    %16 = vector.shape_cast %15 : vector<1x1x4x256xf32> to vector<4x256xf32>
    %17 = vector.broadcast %11 : vector<1x256xf32> to vector<4x256xf32>
    %18 = arith.mulf %17, %14 : vector<4x256xf32>
    %19 = vector.broadcast %12 : vector<1x256xf32> to vector<4x256xf32>
    %20 = arith.mulf %19, %16 : vector<4x256xf32>
    %21 = arith.subf %18, %20 : vector<4x256xf32>
    %22 = arith.addf %4, %21 : vector<4x256xf32>
    %23 = vector.broadcast %11 : vector<1x256xf32> to vector<4x256xf32>
    %24 = arith.mulf %23, %16 : vector<4x256xf32>
    %25 = vector.broadcast %12 : vector<1x256xf32> to vector<4x256xf32>
    %26 = arith.mulf %25, %14 : vector<4x256xf32>
    %27 = arith.addf %24, %26 : vector<4x256xf32>
    %28 = arith.addf %6, %27 : vector<4x256xf32>
    %29 = vector.extract_strided_slice %8 {offsets = [1, 0], sizes = [1, 256], strides = [1, 1]} : vector<4x256xf32> to vector<1x256xf32>
    %30 = vector.extract_strided_slice %10 {offsets = [1, 0], sizes = [1, 256], strides = [1, 1]} : vector<4x256xf32> to vector<1x256xf32>
    %c0_21 = arith.constant 0 : index
    %c1_22 = arith.constant 1 : index
    %c0_23 = arith.constant 0 : index
    %c0_24 = arith.constant 0 : index
    %31 = vector.load %arg4[%c0_21, %c1_22, %c0_23, %c0_24] : memref<2x4x4x256xf32, #tpu.memory_space<vmem>>, vector<1x1x4x256xf32>
    %32 = vector.shape_cast %31 : vector<1x1x4x256xf32> to vector<4x256xf32>
    %c1_25 = arith.constant 1 : index
    %c1_26 = arith.constant 1 : index
    %c0_27 = arith.constant 0 : index
    %c0_28 = arith.constant 0 : index
    %33 = vector.load %arg4[%c1_25, %c1_26, %c0_27, %c0_28] : memref<2x4x4x256xf32, #tpu.memory_space<vmem>>, vector<1x1x4x256xf32>
    %34 = vector.shape_cast %33 : vector<1x1x4x256xf32> to vector<4x256xf32>
    %35 = vector.broadcast %29 : vector<1x256xf32> to vector<4x256xf32>
    %36 = arith.mulf %35, %32 : vector<4x256xf32>
    %37 = vector.broadcast %30 : vector<1x256xf32> to vector<4x256xf32>
    %38 = arith.mulf %37, %34 : vector<4x256xf32>
    %39 = arith.subf %36, %38 : vector<4x256xf32>
    %40 = arith.addf %22, %39 : vector<4x256xf32>
    %41 = vector.broadcast %29 : vector<1x256xf32> to vector<4x256xf32>
    %42 = arith.mulf %41, %34 : vector<4x256xf32>
    %43 = vector.broadcast %30 : vector<1x256xf32> to vector<4x256xf32>
    %44 = arith.mulf %43, %32 : vector<4x256xf32>
    %45 = arith.addf %42, %44 : vector<4x256xf32>
    %46 = arith.addf %28, %45 : vector<4x256xf32>
    %47 = vector.extract_strided_slice %8 {offsets = [2, 0], sizes = [1, 256], strides = [1, 1]} : vector<4x256xf32> to vector<1x256xf32>
    %48 = vector.extract_strided_slice %10 {offsets = [2, 0], sizes = [1, 256], strides = [1, 1]} : vector<4x256xf32> to vector<1x256xf32>
    %c0_29 = arith.constant 0 : index
    %c2 = arith.constant 2 : index
    %c0_30 = arith.constant 0 : index
    %c0_31 = arith.constant 0 : index
    %49 = vector.load %arg4[%c0_29, %c2, %c0_30, %c0_31] : memref<2x4x4x256xf32, #tpu.memory_space<vmem>>, vector<1x1x4x256xf32>
    %50 = vector.shape_cast %49 : vector<1x1x4x256xf32> to vector<4x256xf32>
    %c1_32 = arith.constant 1 : index
    %c2_33 = arith.constant 2 : index
    %c0_34 = arith.constant 0 : index
    %c0_35 = arith.constant 0 : index
    %51 = vector.load %arg4[%c1_32, %c2_33, %c0_34, %c0_35] : memref<2x4x4x256xf32, #tpu.memory_space<vmem>>, vector<1x1x4x256xf32>
    %52 = vector.shape_cast %51 : vector<1x1x4x256xf32> to vector<4x256xf32>
    %53 = vector.broadcast %47 : vector<1x256xf32> to vector<4x256xf32>
    %54 = arith.mulf %53, %50 : vector<4x256xf32>
    %55 = vector.broadcast %48 : vector<1x256xf32> to vector<4x256xf32>
    %56 = arith.mulf %55, %52 : vector<4x256xf32>
    %57 = arith.subf %54, %56 : vector<4x256xf32>
    %58 = arith.addf %40, %57 : vector<4x256xf32>
    %59 = vector.broadcast %47 : vector<1x256xf32> to vector<4x256xf32>
    %60 = arith.mulf %59, %52 : vector<4x256xf32>
    %61 = vector.broadcast %48 : vector<1x256xf32> to vector<4x256xf32>
    %62 = arith.mulf %61, %50 : vector<4x256xf32>
    %63 = arith.addf %60, %62 : vector<4x256xf32>
    %64 = arith.addf %46, %63 : vector<4x256xf32>
    %65 = vector.extract_strided_slice %8 {offsets = [3, 0], sizes = [1, 256], strides = [1, 1]} : vector<4x256xf32> to vector<1x256xf32>
    %66 = vector.extract_strided_slice %10 {offsets = [3, 0], sizes = [1, 256], strides = [1, 1]} : vector<4x256xf32> to vector<1x256xf32>
    %c0_36 = arith.constant 0 : index
    %c3 = arith.constant 3 : index
    %c0_37 = arith.constant 0 : index
    %c0_38 = arith.constant 0 : index
    %67 = vector.load %arg4[%c0_36, %c3, %c0_37, %c0_38] : memref<2x4x4x256xf32, #tpu.memory_space<vmem>>, vector<1x1x4x256xf32>
    %68 = vector.shape_cast %67 : vector<1x1x4x256xf32> to vector<4x256xf32>
    %c1_39 = arith.constant 1 : index
    %c3_40 = arith.constant 3 : index
    %c0_41 = arith.constant 0 : index
    %c0_42 = arith.constant 0 : index
    %69 = vector.load %arg4[%c1_39, %c3_40, %c0_41, %c0_42] : memref<2x4x4x256xf32, #tpu.memory_space<vmem>>, vector<1x1x4x256xf32>
    %70 = vector.shape_cast %69 : vector<1x1x4x256xf32> to vector<4x256xf32>
    %71 = vector.broadcast %65 : vector<1x256xf32> to vector<4x256xf32>
    %72 = arith.mulf %71, %68 : vector<4x256xf32>
    %73 = vector.broadcast %66 : vector<1x256xf32> to vector<4x256xf32>
    %74 = arith.mulf %73, %70 : vector<4x256xf32>
    %75 = arith.subf %72, %74 : vector<4x256xf32>
    %76 = arith.addf %58, %75 : vector<4x256xf32>
    %77 = vector.broadcast %65 : vector<1x256xf32> to vector<4x256xf32>
    %78 = arith.mulf %77, %70 : vector<4x256xf32>
    %79 = vector.broadcast %66 : vector<1x256xf32> to vector<4x256xf32>
    %80 = arith.mulf %79, %68 : vector<4x256xf32>
    %81 = arith.addf %78, %80 : vector<4x256xf32>
    %82 = arith.addf %64, %81 : vector<4x256xf32>
    %c0_43 = arith.constant 0 : index
    %c0_44 = arith.constant 0 : index
    %c0_45 = arith.constant 0 : index
    %83 = vector.load %arg7[%c0_43, %c0_44, %c0_45] : memref<2x4x256xf32, #tpu.memory_space<vmem>>, vector<1x4x256xf32>
    %84 = vector.shape_cast %83 : vector<1x4x256xf32> to vector<4x256xf32>
    %85 = vector.shape_cast %76 : vector<4x256xf32> to vector<1x4x256xf32>
    tpu.vector_store %arg7[%c0_43, %c0_44, %c0_45], %85 {strides = array<i32>} : memref<2x4x256xf32, #tpu.memory_space<vmem>>, vector<1x4x256xf32>,
    %c1_46 = arith.constant 1 : index
    %c0_47 = arith.constant 0 : index
    %c0_48 = arith.constant 0 : index
    %86 = vector.load %arg7[%c1_46, %c0_47, %c0_48] : memref<2x4x256xf32, #tpu.memory_space<vmem>>, vector<1x4x256xf32>
    %87 = vector.shape_cast %86 : vector<1x4x256xf32> to vector<4x256xf32>
    %88 = vector.shape_cast %82 : vector<4x256xf32> to vector<1x4x256xf32>
    tpu.vector_store %arg7[%c1_46, %c0_47, %c0_48], %88 {strides = array<i32>} : memref<2x4x256xf32, #tpu.memory_space<vmem>>, vector<1x4x256xf32>,
    %c0_i32_49 = arith.constant 0 : i32
    %89 = arith.cmpi eq, %arg2, %c0_i32_49 : i32
    %90 = arith.extui %89 : i1 to i32
    %c0_i32_50 = arith.constant 0 : i32
    %91 = arith.cmpi ne, %90, %c0_i32_50 : i32
    scf.if %91 {
      %c0_51 = arith.constant 0 : index
      %c0_52 = arith.constant 0 : index
      %c0_53 = arith.constant 0 : index
      %92 = vector.load %arg7[%c0_51, %c0_52, %c0_53] : memref<2x4x256xf32, #tpu.memory_space<vmem>>, vector<1x4x256xf32>
      %93 = vector.shape_cast %92 : vector<1x4x256xf32> to vector<4x256xf32>
      %c1_54 = arith.constant 1 : index
      %c0_55 = arith.constant 0 : index
      %c0_56 = arith.constant 0 : index
      %94 = vector.load %arg7[%c1_54, %c0_55, %c0_56] : memref<2x4x256xf32, #tpu.memory_space<vmem>>, vector<1x4x256xf32>
      %95 = vector.shape_cast %94 : vector<1x4x256xf32> to vector<4x256xf32>
      %c0_57 = arith.constant 0 : index
      %c0_58 = arith.constant 0 : index
      %c0_59 = arith.constant 0 : index
      %96 = vector.load %arg5[%c0_57, %c0_58, %c0_59] : memref<2x4x256xf32, #tpu.memory_space<vmem>>, vector<1x4x256xf32>
      %97 = vector.shape_cast %96 : vector<1x4x256xf32> to vector<4x256xf32>
      %98 = arith.addf %93, %97 : vector<4x256xf32>
      %c1_60 = arith.constant 1 : index
      %c0_61 = arith.constant 0 : index
      %c0_62 = arith.constant 0 : index
      %99 = vector.load %arg5[%c1_60, %c0_61, %c0_62] : memref<2x4x256xf32, #tpu.memory_space<vmem>>, vector<1x4x256xf32>
      %100 = vector.shape_cast %99 : vector<1x4x256xf32> to vector<4x256xf32>
      %101 = arith.addf %95, %100 : vector<4x256xf32>
      %c0_63 = arith.constant 0 : index
      %c0_64 = arith.constant 0 : index
      %c0_65 = arith.constant 0 : index
      %c0_66 = arith.constant 0 : index
      %102 = vector.load %arg6[%c0_63, %c0_64, %c0_65, %c0_66] : memref<1x2x4x256xf32, #tpu.memory_space<vmem>>, vector<1x1x4x256xf32>
      %103 = vector.shape_cast %102 : vector<1x1x4x256xf32> to vector<4x256xf32>
      %104 = vector.shape_cast %98 : vector<4x256xf32> to vector<1x1x4x256xf32>
      tpu.vector_store %arg6[%c0_63, %c0_64, %c0_65, %c0_66], %104 {strides = array<i32>} : memref<1x2x4x256xf32, #tpu.memory_space<vmem>>, vector<1x1x4x256xf32>,
      %c0_67 = arith.constant 0 : index
      %c1_68 = arith.constant 1 : index
      %c0_69 = arith.constant 0 : index
      %c0_70 = arith.constant 0 : index
      %105 = vector.load %arg6[%c0_67, %c1_68, %c0_69, %c0_70] : memref<1x2x4x256xf32, #tpu.memory_space<vmem>>, vector<1x1x4x256xf32>
      %106 = vector.shape_cast %105 : vector<1x1x4x256xf32> to vector<4x256xf32>
      %107 = vector.shape_cast %101 : vector<4x256xf32> to vector<1x1x4x256xf32>
      tpu.vector_store %arg6[%c0_67, %c1_68, %c0_69, %c0_70], %107 {strides = array<i32>} : memref<1x2x4x256xf32, #tpu.memory_space<vmem>>, vector<1x1x4x256xf32>,
    } else {
    }
    return
  }
  func.func @transform_0(%arg0: i32, %arg1: i32, %arg2: i32) -> (i32, i32, i32, i32) {
    %c0_i32 = arith.constant 0 : i32
    %c0_i32_0 = arith.constant 0 : i32
    %c0_i32_1 = arith.constant 0 : i32
    return %arg0, %c0_i32, %arg2, %c0_i32_0 : i32, i32, i32, i32
  }
  func.func @transform_1(%arg0: i32, %arg1: i32, %arg2: i32) -> (i32, i32, i32, i32) {
    %c0_i32 = arith.constant 0 : i32
    %c0_i32_0 = arith.constant 0 : i32
    %c0_i32_1 = arith.constant 0 : i32
    return %c0_i32, %arg2, %arg1, %c0_i32_0 : i32, i32, i32, i32
  }
  func.func @transform_2(%arg0: i32, %arg1: i32, %arg2: i32) -> (i32, i32, i32) {
    %c0_i32 = arith.constant 0 : i32
    %c0_i32_0 = arith.constant 0 : i32
    %c0_i32_1 = arith.constant 0 : i32
    return %c0_i32, %arg1, %c0_i32_0 : i32, i32, i32
  }
  func.func @transform_3(%arg0: i32, %arg1: i32, %arg2: i32) -> (i32, i32, i32, i32) {
    %c0_i32 = arith.constant 0 : i32
    %c0_i32_0 = arith.constant 0 : i32
    %c0_i32_1 = arith.constant 0 : i32
    return %arg0, %c0_i32, %arg1, %c0_i32_0 : i32, i32, i32, i32
  }
}

</mosaic_0001>

<bundles_post_ra>
// kernel: tpu_custom_call.1
= control target key start
LH: loop header
LB: loop body
LE: loop exit
PB: predicated region body
PF: predicated region fallthrough
CT: control target
= control target key end

     0   :  { %8 = vsyncpa [#allocation4], 0  ;;  %s1284_s0 = inlined_call_operand.hbm [shape: f32[2,2,4,256], index: 0, kind: input, shape index: {}]   ;;  %s1285_s1 = inlined_call_operand.hbm [shape: f32[2,4,4,256], index: 1, kind: input, shape index: {}]   ;;  %s1286_s2 = inlined_call_operand.hbm [shape: f32[2,4,256], index: 2, kind: input, shape index: {}]   ;;  %s1287_s3 = inlined_call_operand.hbm [shape: f32[2,2,4,256], index: 3, kind: output, shape index: {}]  }
   0x1   :  { %10 = vsyncpa [#allocation4 + $0x1], 0 }
   0x2   :  { %11 = vsyncpa [#allocation7], 0 }
   0x3   :  { %12 = vsyncpa [#allocation5], 0 }
   0x4   :  { %14 = vsyncpa [#allocation5 + $0x1], 0  ;;  %s1009_s12 = smov 0   ;;  %s1011_s13 = smov 0  }
   0x5   :  { %s1013_s14 = smov 0   ;;  %s1015_s15 = smov 0  }
   0x6   :  { %s1017_s16 = smov 0   ;;  %s1019_s17 = smov 0  }
   0x7 LB: > { %s697_s18 = sadd.s32 4294967295, %s979_s17   ;;  %s698_s19 = sadd.s32 4294967294, %s979_s17   ;;  %s979_s17 = sphi %s1019_s17, %s20_s17   ;;  %s975_s16 = sphi %s1017_s16, %s1304_s16   ;;  %s971_s15 = sphi %s1015_s15, %s1303_s15   ;;  %s967_s14 = sphi %s1013_s14, %s1302_s14   ;;  %s963_s13 = sphi %s1011_s13, %s1301_s13   ;;  %s959_s12 = sphi %s1009_s12, %s1300_s12  }
   0x8   : > { %p61_p0 = scmp.ne.s32.totalorder %s963_s13, %s959_s12  ;;  %p1043_p1 = scmp.eq.s32.totalorder %s697_s18, 0 }
   0x9   : > { %p1047_p2 = scmp.eq.s32.totalorder %s697_s18, 1  ;;  %p147_p3 = scmp.eq.s32.totalorder %s698_s19, 1 }
   0xa   : > { %p1053_p4 = por %p1043_p1, %p61_p0  ;;  %p699_p5 = scmp.ge.s32.totalorder %s979_s17, 1 }
   0xb   : > { %p1058_p6 = por %p147_p3, %p61_p0  ;;  %p154_p7 = scmp.lt.s32.totalorder %s979_s17, 3 }
   0xc   : > { %s981_s25 = smov [#allocation6]   ;;  %s982_s28 = smov [#allocation8]  }
   0xd   : > { %s1292_s23 = scalar_select %p1058_p6, 1, 0 }
   0xe   : > { %p1063_p8 = pnand %p699_p5, %p154_p7  ;;  %s172_s26 = sshll.u32 %s981_s25, 4  ;;  %s173_s26 = int_to_ptr.vmem [resolvable:$true] %s172_s26 }
   0xf   : > { %s188_s29 = sshll.u32 %s982_s28, 4  ;;  %s826_s30 = scalar_lea.vmem %s173_s26, 1024  ;;  %s189_s29 = int_to_ptr.vmem [resolvable:$true] %s188_s29 }
  0x10   : > { %p732_p9 = pneg %p1063_p8  ;;  %p827_p13 = scmp.ne.s32.totalorder %s173_s26, %s826_s30 }
  0x11   : > { %p834_p5 = scmp.lt.s32.totalorder %s173_s26, %s173_s26  ;;  %p835_p7 = scmp.lt.s32.totalorder %s826_s30, %s826_s30 }
  0x12   : > { %p1072_p11 = pnand %p732_p9, %p1043_p1 }
  0x13   : > { %p836_p10 = por %p835_p7, %p834_p5 }
  0x14   : > { %p817_p12 = pneg %p1072_p11 }
  0x16   : > { %p829_p0 = pnand %p827_p13, %p817_p12 }
  0x18   : > { %p830_p3 = pneg %p829_p0 }
  0x1a   : > { %p837_p9 = pnand %p836_p10, %p830_p3 }
  0x1c   : > { %840 = shalt.err (!%p837_p9)
}
  0x1d   : > { %s1288_s4 = smov 128   ;;  %s984_s5 = smov 8  }
  0x1e   : > { %735 = dma.hbm_to_vmem [thread:$0]  (!%p1072_p11), %s1285_s1, 1024, %s173_s26, [#allocation7], %s1288_s4, %s1288_s4, %s984_s5  }
  0x1f   : > { %s852_s8 = scalar_lea.vmem %s189_s29, 256  ;;  %p860_p10 = scmp.lt.s32.totalorder %s189_s29, %s189_s29 }
  0x20   : > { %p853_p13 = scmp.ne.s32.totalorder %s189_s29, %s852_s8  ;;  %p861_p3 = scmp.lt.s32.totalorder %s852_s8, %s852_s8 }
  0x22   : > { %p855_p0 = pnand %p853_p13, %p817_p12  ;;  %p862_p7 = por %p861_p3, %p860_p10 }
  0x24   : > { %p856_p5 = pneg %p855_p0 }
  0x26   : > { %p863_p9 = pnand %p862_p7, %p856_p5 }
  0x28   : > { %866 = shalt.err (!%p863_p9)
}
  0x29   : > { %738 = dma.hbm_to_vmem [thread:$0]  (!%p1072_p11), %s1286_s2, 256, %s189_s29, [#allocation7], %s1288_s4, %s1288_s4, %s984_s5  }
  0x2a   : > { %s39_s11 = sadd.s32 1, %s975_s16  ;;  %s48_s18 = sadd.s32 1, %s967_s14 }
  0x2b   : > { %p41_p12 = scmp.ge.s32.totalorder %s39_s11, 2  ;;  %p55_p13 = scmp.ne.s32.totalorder %s967_s14, %s963_s13 }
  0x2c   : > { %p56_p0 = scmp.eq.s32.totalorder %s979_s17, 0  ;;  %p749_p5 = scmp.lt.s32.totalorder %s979_s17, 2 }
  0x2d   : > { %s1306_s11 = smov (%p41_p12, %s39_s11), 0  ;;  %p1110_p3 = por %p1047_p2, %p55_p13 }
  0x2e   : > { %p57_p10 = por %p56_p0, %p55_p13  ;;  %s43_s25 = ssub.s32 %s975_s16, %s1306_s11 }
  0x2f   : > { %s202_s26 = sand.u32 1, %s967_s14   ;;  %p46_p7 = scmp.eq.s32.totalorder %s43_s25, 0 }
  0x30   : > { %s703_s27 = sshll.u32 %s202_s26, 4  ;;  %s718_s28 = sshll.u32 %s975_s16, 8 }
  0x31   : > { %s1119_s29 = scalar_select %p46_p7, %s967_s14, %s48_s18  }
  0x32   : > { %s214_s7 = scalar_lea.hbm %s1284_s0, %s718_s28  ;;  %s206_s8 = scalar_lea.vmem [#allocation3], %s703_s27 }
  0x33   : > { %s215_s9 = sshll.u32 %s206_s8, 4  ;;  %p1126_p11 = pnand %p749_p5, %p57_p10  ;;  %s216_s9 = int_to_ptr.vmem [resolvable:$true] %s215_s9 }
  0x34   : > { %s203_s10 = scalar_lea.sflag [#allocation4], %s202_s26  ;;  %s880_s25 = scalar_lea.vmem %s216_s9, 256 }
  0x35   : > { %p869_p2 = pneg %p1126_p11  ;;  %p881_p9 = scmp.ne.s32.totalorder %s216_s9, %s880_s25 }
  0x36   : > { %s985_s18 = smov [#allocation3]  }
  0x37   : > { %p883_p12 = pnand %p881_p9, %p869_p2  ;;  %s885_s4 = sshll.u32 %s985_s18, 4  ;;  %s886_s4 = int_to_ptr.vmem [resolvable:$false] %s885_s4 }
  0x38   : > { %s887_s28 = scalar_lea.vmem %s886_s4, 512  ;;  %p888_p0 = scmp.lt.s32.totalorder %s216_s9, %s886_s4 }
  0x39   : > { %p884_p13 = pneg %p883_p12  ;;  %p889_p7 = scmp.lt.s32.totalorder %s887_s28, %s880_s25 }
  0x3b   : > { %p890_p6 = por %p889_p7, %p888_p0 }
  0x3d   : > { %p891_p5 = pnand %p890_p6, %p884_p13 }
  0x3f   : > { %894 = shalt.err (!%p891_p5)
}
  0x40   : > { %s1297_s27 = smov 128   ;;  %227 = sbr.rel (%p1063_p8) target bundleno = 123 (0x7b), region = 32 }
  0x41   : > { %742 = dma.hbm_to_vmem [thread:$0]  (!%p1126_p11), %s214_s7, 256, %s216_s9, %s203_s10, %s1297_s27, %s1297_s27, %s984_s5  }
  0x42   : > { %s1140_s26 = sand.u32 (!%p1063_p8), 1, %s963_s13  }
  0x43   : > { %s707_s4 = sshll.u32 (!%p1063_p8), %s1140_s26, 4  ;;  %s230_s30 = scalar_lea.sflag (!%p1063_p8), [#allocation4], %s1140_s26 }
  0x44   : > { %s233_s6 = scalar_lea.vmem (!%p1063_p8), [#allocation3], %s707_s4 }
  0x45   : > { %946 = dma.done.wait (%p1053_p4), %s230_s30, 256  }
  0x46   : > { %948 = vsyncadd (%p1053_p4), %s230_s30, 4294967040 }
  0x47   : > { %950 = dma.done.wait (%p1043_p1), [#allocation7], 1280  }
  0x48   : > { %952 = vsyncadd (%p1043_p1), [#allocation7], 4294966016  ;;  %v281_v0 = vlaneseq  ;;  %v1161_v7 = vld [vmem:[%s233_s6] sm:$0xff]  ;;  %v1163_v8 = vld [vmem:[%s233_s6 + $0x8] sm:$0xff]  ;;  %s263_s20 = scalar_lea.vmem [#allocation9], %s707_s4  ;;  %s719_s24 = sshll.u32 %s971_s15, 8 }
  0x49   : > { %v1165_v9 = vld [vmem:[#allocation6] sm:$0xff]  ;;  %v1181_v18 = vld [vmem:[#allocation6 + $0x8] sm:$0xff]  ;;  %v1199_v36 = vld [vmem:[#allocation6 + $0x10] sm:$0xff]  ;;  %s581_s22 = sshll.u32 %s263_s20, 4  ;;  %s1236_s8 = scalar_lea.hbm %s1287_s3, %s719_s24  ;;  %s1231_s22 = int_to_ptr.vmem [resolvable:$true] %s581_s22 }
  0x4a   : > { %v1154_v1 = vshrl.u32 %v281_v0, 7  ;;  %v1172_v13 = vld [vmem:[#allocation6 + $0x20] sm:$0xff]  ;;  %v1178_v16 = vcombine.high %v1165_v9, %v1165_v9  ;;  %v1192_v26 = vcombine.high %v1181_v18, %v1181_v18  ;;  %v349_v28 = vld [vmem:[#allocation6 + $0x28] sm:$0xff]  ;;  %v417_v44 = vld [vmem:[#allocation6 + $0x30] sm:$0xff]  ;;  %v437_v49 = vcombine.high %v1199_v36, %v1199_v36  ;;  %s566_s9 = scalar_lea.sflag [#allocation5], %s1140_s26  ;;  %s895_s21 = scalar_lea.vmem %s1231_s22, 256 }
  0x4b   : > { %v1186_v20 = vcombine.high %v1172_v13, %v1172_v13  ;;  %v392_v43 = vcombine.high %v349_v28, %v349_v28  ;;  %v483_v54 = vld [vmem:[#allocation6 + $0x18] sm:$0xff]  ;;  %v460_v58 = vcombine.high %v417_v44, %v417_v44  ;;  %p896_p1 = scmp.ne.s32.totalorder %s1231_s22, %s895_s21  ;;  %s986_s15 = smov [#allocation9]  }
  0x4c   : > { %v283_v2 = vsub.s32 0, %v1154_v1  ;;  %v287_v3 = vsub.s32 4, %v1154_v1  ;;  %v352_v4 = vsub.s32 1, %v1154_v1  ;;  %v356_v5 = vsub.s32 5, %v1154_v1  ;;  %v485_v63 = vld [vmem:[#allocation6 + $0x38] sm:$0xff]  ;;  %s899_s10 = sshll.u32 %s986_s15, 4  ;;  %s900_s10 = int_to_ptr.vmem [resolvable:$false] %s899_s10 }
  0x4d   : > { %v420_v6 = vsub.s32 2, %v1154_v1  ;;  %v424_v10 = vsub.s32 6, %v1154_v1  ;;  %v1169_v11 = vsub.s32 3, %v1154_v1  ;;  %v492_v12 = vsub.s32 7, %v1154_v1  ;;  %p897_p4 = pnand %p896_p1, %p1110_p3  ;;  %s901_s25 = scalar_lea.vmem %s900_s10, 512 }
  0x4e   : > { %v284_v14 = vrot.slane %v1161_v7, %v283_v2  ;;  %v288_v15 = vrot.slane %v1161_v7, %v287_v3  ;;  %v308_v17 = vrot.slane %v1163_v8, %v283_v2  ;;  %v312_v19 = vrot.slane %v1163_v8, %v287_v3  ;;  %p902_p8 = scmp.lt.s32.totalorder %s1231_s22, %s900_s10  ;;  %p903_p10 = scmp.lt.s32.totalorder %s901_s25, %s895_s21 }
  0x4f   : > { %v353_v21 = vrot.slane %v1161_v7, %v352_v4  ;;  %v357_v22 = vrot.slane %v1161_v7, %v356_v5  ;;  %v376_v31 = vrot.slane %v1163_v8, %v352_v4  ;;  %v380_v35 = vrot.slane %v1163_v8, %v356_v5  ;;  %p898_p6 = pneg %p897_p4 }
  0x50   : > { %v294_v23 = vrot.slane %v284_v14, %v283_v2  ;;  %v298_v24 = vrot.slane %v288_v15, %v283_v2  ;;  %v318_v25 = vrot.slane %v308_v17, %v283_v2  ;;  %v322_v27 = vrot.slane %v312_v19, %v283_v2  ;;  %p904_p11 = por %p903_p10, %p902_p8 }
  0x51   : > { %v363_v29 = vrot.slane %v353_v21, %v352_v4  ;;  %v367_v30 = vrot.slane %v357_v22, %v352_v4  ;;  %v386_v40 = vrot.slane %v376_v31, %v352_v4  ;;  %v390_v42 = vrot.slane %v380_v35, %v352_v4 }
  0x52   : > { %v302_v32 = vmul.f32 %v294_v23, %v1165_v9  ;;  %v303_v33 = vmul.f32 %v1178_v16, %v298_v24  ;;  %v326_v34 = vmul.f32 %v318_v25, %v1172_v13  ;;  %v327_v37 = vmul.f32 %v1186_v20, %v322_v27  ;;  %p905_p2 = pnand %p904_p11, %p898_p6 }
  0x53   : > { %v371_v38 = vmul.f32 %v363_v29, %v1181_v18  ;;  %v372_v39 = vmul.f32 %v1192_v26, %v367_v30  ;;  %v421_v45 = vrot.slane %v1161_v7, %v420_v6  ;;  %v394_v47 = vmul.f32 %v386_v40, %v349_v28 }
  0x54   : > { %v328_v41 = vsub.f32 %v302_v32, %v326_v34  ;;  %v329_v46 = vsub.f32 %v303_v33, %v327_v37  ;;  %v425_v48 = vrot.slane %v1161_v7, %v424_v10  ;;  %v395_v50 = vmul.f32 %v392_v43, %v390_v42 }
  0x55   : > { %v431_v51 = vrot.slane %v421_v45, %v420_v6  ;;  %v444_v52 = vrot.slane %v1163_v8, %v420_v6  ;;  %v448_v53 = vrot.slane %v1163_v8, %v424_v10  ;;  %v396_v56 = vsub.f32 %v371_v38, %v394_v47 }
  0x56   : > { %v332_v55 = vcombine.low %v328_v41, %v329_v46  ;;  %v435_v57 = vrot.slane %v425_v48, %v420_v6  ;;  %v397_v59 = vsub.f32 %v372_v39, %v395_v50  ;;  %v489_v1 = vrot.slane %v1161_v7, %v1169_v11 }
  0x57   : > { %v439_v60 = vmul.f32 %v431_v51, %v1199_v36  ;;  %v454_v61 = vrot.slane %v444_v52, %v420_v6  ;;  %v458_v62 = vrot.slane %v448_v53, %v420_v6  ;;  %v493_v2 = vrot.slane %v1161_v7, %v492_v12 }
  0x58   : > { %v440_v0 = vmul.f32 %v437_v49, %v435_v57  ;;  %v505_v3 = vcombine.high %v483_v54, %v483_v54  ;;  %v400_v4 = vcombine.low %v396_v56, %v397_v59  ;;  %v512_v14 = vrot.slane %v1163_v8, %v1169_v11 }
  0x59   : > { %v462_v5 = vmul.f32 %v454_v61, %v417_v44  ;;  %v463_v10 = vmul.f32 %v460_v58, %v458_v62  ;;  %v499_v15 = vrot.slane %v489_v1, %v1169_v11  ;;  %v503_v17 = vrot.slane %v493_v2, %v1169_v11 }
  0x5a   : > { %v516_v6 = vrot.slane %v1163_v8, %v492_v12  ;;  %v528_v19 = vcombine.high %v485_v63, %v485_v63  ;;  %v402_v21 = vadd.f32 %v400_v4, %v332_v55  ;;  %v522_v32 = vrot.slane %v512_v14, %v1169_v11 }
  0x5b   : > { %v464_v22 = vsub.f32 %v439_v60, %v462_v5  ;;  %v465_v31 = vsub.f32 %v440_v0, %v463_v10  ;;  %v507_v7 = vmul.f32 %v499_v15, %v483_v54  ;;  %v508_v33 = vmul.f32 %v505_v3, %v503_v17  ;;  %v560_v60 = vld [vmem:[#allocation8 + $0x8] sm:$0xff] }
  0x5c   : > { %v526_v34 = vrot.slane %v516_v6, %v1169_v11  ;;  %v335_v35 = vmul.f32 %v294_v23, %v1172_v13  ;;  %v530_v38 = vmul.f32 %v522_v32, %v485_v63  ;;  %v336_v39 = vmul.f32 %v1186_v20, %v298_v24 }
  0x5d   : > { %v468_v37 = vcombine.low %v464_v22, %v465_v31  ;;  %v337_v41 = vmul.f32 %v318_v25, %v1165_v9  ;;  %v338_v8 = vmul.f32 %v322_v27, %v1178_v16  ;;  %v403_v12 = vmul.f32 %v363_v29, %v349_v28  ;;  %v557_v28 = vld [vmem:[#allocation8] sm:$0xff] }
  0x5e   : > { %v531_v45 = vmul.f32 %v528_v19, %v526_v34  ;;  %v404_v46 = vmul.f32 %v392_v43, %v367_v30  ;;  %v532_v48 = vsub.f32 %v507_v7, %v530_v38  ;;  %v405_v52 = vmul.f32 %v386_v40, %v1181_v18 }
  0x5f   : > { %v470_v47 = vadd.f32 %v468_v37, %v402_v21  ;;  %v339_v50 = vadd.f32 %v337_v41, %v335_v35  ;;  %v340_v11 = vadd.f32 %v338_v8, %v336_v39  ;;  %v406_v13 = vmul.f32 %v390_v42, %v1192_v26 }
  0x60   : > { %v533_v53 = vsub.f32 %v508_v33, %v531_v45  ;;  %v471_v23 = vmul.f32 %v431_v51, %v417_v44  ;;  %v407_v55 = vadd.f32 %v405_v52, %v403_v12  ;;  %v472_v56 = vmul.f32 %v460_v58, %v435_v57 }
  0x61   : > { %v473_v20 = vmul.f32 %v454_v61, %v1199_v36  ;;  %v474_v9 = vmul.f32 %v458_v62, %v437_v49  ;;  %v343_v25 = vcombine.low %v339_v50, %v340_v11  ;;  %v408_v16 = vadd.f32 %v406_v13, %v404_v46 }
  0x62   : > { %v536_v24 = vcombine.low %v532_v48, %v533_v53  ;;  %v539_v27 = vmul.f32 %v499_v15, %v485_v63  ;;  %v540_v18 = vmul.f32 %v528_v19, %v503_v17  ;;  %v541_v40 = vmul.f32 %v522_v32, %v483_v54 }
  0x63   : > { %v475_v29 = vadd.f32 %v473_v20, %v471_v23  ;;  %v476_v30 = vadd.f32 %v474_v9, %v472_v56  ;;  %v411_v59 = vcombine.low %v407_v55, %v408_v16  ;;  %v542_v26 = vmul.f32 %v526_v34, %v505_v3 }
  0x64   : > { %v538_v43 = vadd.f32 %v536_v24, %v470_v47  ;;  %v543_v44 = vadd.f32 %v541_v40, %v539_v27 }
  0x65   : > { %v479_v42 = vcombine.low %v475_v29, %v476_v30  ;;  %v413_v36 = vadd.f32 %v411_v59, %v343_v25  ;;  %v544_v49 = vadd.f32 %v542_v26, %v540_v18 }
  0x66   : > { %v558_v51 = vadd.f32 %v557_v28, %v538_v43 }
  0x67   : > { %v481_v57 = vadd.f32 %v479_v42, %v413_v36  ;;  %v547_v58 = vcombine.low %v543_v44, %v544_v49 }
  0x68   : > { %562 = vst [vmem:[%s263_s20] sm:$0xff] %v558_v51 }
  0x69   : > { %v549_v61 = vadd.f32 %v547_v58, %v481_v57 }
  0x6b   : > { %v561_v54 = vadd.f32 %v560_v60, %v549_v61 }
  0x6d   : > { %712 = vst [vmem:[%s263_s20 + $0x8] sm:$0xff] %v561_v54 }
  0x6e   : > { %908 = shalt.err (!%p905_p2)
}
  0x6f   : > { %s909_s18 = scalar_lea.hbm %s1236_s8, 256  ;;  %s913_s4 = scalar_lea.hbm %s1287_s3, 512 }
  0x70   : > { %p910_p9 = scmp.ne.s32.totalorder %s1236_s8, %s909_s18  ;;  %p914_p0 = scmp.lt.s32.totalorder %s1236_s8, %s1287_s3 }
  0x71   : > { %p915_p7 = scmp.lt.s32.totalorder %s913_s4, %s909_s18 }
  0x72   : > { %p911_p12 = pnand %p910_p9, %p1110_p3 }
  0x73   : > { %p916_p5 = por %p915_p7, %p914_p0 }
  0x74   : > { %p912_p13 = pneg %p911_p12 }
  0x76   : > { %p917_p1 = pnand %p916_p5, %p912_p13 }
  0x78   : > { %920 = shalt.err (!%p917_p1)
}
  0x79   : > { %s987_s20 = smov 128   ;;  %s988_s24 = smov 8  }
  0x7a   : > { %730 = dma.vmem_to_hbm [thread:$0]  (%p1110_p3), %s1231_s22, 256, %s1236_s8, %s566_s9, %s987_s20, %s987_s20, %s988_s24  }
  0x7b PF: > { %s596_s5 = sand.u32 1, %s959_s12   ;;  %p1298_p4 = scmp.ne.s32.totalorder %s1292_s23, 0 }
  0x7c   : > { %p1299_p6 = scmp.ge.s32.totalorder %s979_s17, 2  ;;  %s597_s7 = scalar_lea.sflag [#allocation5], %s596_s5 }
  0x7e   : > { %p744_p8 = pnand %p1299_p6, %p1298_p4 }
  0x80   : > { %p745_p10 = pneg %p744_p8 }
  0x82   : > { %954 = dma.done.wait (%p745_p10), %s597_s7, 256  }
  0x83   : > { %956 = vsyncadd (%p745_p10), %s597_s7, 4294967040  ;;  %s20_s17 = sadd.s32 1, %s979_s17   ;;  %s1300_s12 = smov %s963_s13 }
  0x84   : > { %p17_p11 = scmp.ge.s32.totalorder %s20_s17, 4   ;;  %s1301_s13 = smov %s967_s14 }
  0x85   : > { %s1302_s14 = smov %s1119_s29  ;;  %s1303_s15 = smov %s975_s16 }
  0x86   : > { %s1304_s16 = smov %s1306_s11  ;;  %19 = sbr.rel (!%p17_p11) target bundleno = 7 (0x7), region = 106 }
  0x8b   :  { %602 = vsyncpa [#allocation4], 1 }
  0x8c   :  { %604 = vsyncpa [#allocation4 + $0x1], 1 }
  0x8d   :  { %605 = vsyncpa [#allocation7], 1 }
  0x8e   :  { %606 = vsyncpa [#allocation5], 1 }
  0x8f   :  { %608 = vsyncpa [#allocation5 + $0x1], 1 }

</bundles_post_ra>
